<compile_context>
chip_gen: v7x
topology: tpu7x:2x2x1
jax: 0.10.0
libtpu: 0.0.40
codegen_flags: <defaults>
</compile_context>

<pallas_src>
import math

import jax
import jax.numpy as jnp
from jax.experimental import pallas as pl
from jax.experimental.pallas import tpu as pltpu


def _nf_kernel(x_ref, masks_ref, w1t_ref, b1t_ref, w2t_ref, b2t_ref,
               zs_ref, stats_ref):
    """One batch tile (batch on the lane axis); all K flows unrolled.

    x_ref     : (d, bm)          input batch tile, transposed
    masks_ref : (K, d, 1)        binary coupling masks (column vectors)
    w1t_ref   : (K, 2h, d)       fused first-layer weights  [w1 | u1]^T
    b1t_ref   : (K, 2h, 1)       fused first-layer biases   [b1 | c1]
    w2t_ref   : (K, 2d, 2h)      block-diag second layer    [[w2^T,0],[0,u2^T]]
    b2t_ref   : (K, 2d, 1)       fused second-layer biases  [b2 | c2]
    zs_ref    : (K*d, bm)        all flow outputs (flow-major, batch on lanes)
    stats_ref : (2, bm)          row 0: N(0,I) log-prob of final latent
                                 row 1: accumulated log|det J|
    """
    K, d, _ = masks_ref.shape
    bm = x_ref.shape[1]

    z = x_ref[...].astype(jnp.float32)           # running latent (d, bm)
    ld = jnp.zeros((1, bm), jnp.float32)         # running log-det (1, bm)

    for k in range(K):                           # static unroll over flows
        mask = masks_ref[k]                      # (d, 1), broadcasts over lanes
        inv_mask = 1.0 - mask

        xa = z * mask                            # conditioning half

        # Fused s/t first layer: one MXU push -> (2h, bm)
        h = jnp.tanh(
            jnp.dot(w1t_ref[k], xa, preferred_element_type=jnp.float32)
            + b1t_ref[k])
        # Fused (block-diagonal) second layer: one MXU push -> (2d, bm)
        st = (jnp.dot(w2t_ref[k], h, preferred_element_type=jnp.float32)
              + b2t_ref[k])
        s = st[:d, :] * inv_mask                 # sublane split, rows 0:d
        t = st[d:, :] * inv_mask                 # rows d:2d

        z = xa + inv_mask * (z * jnp.exp(s) + t)
        ld = ld + jnp.sum(s, axis=0, keepdims=True)

        # Full-lane-width, unmasked store of this flow's latent.
        zs_ref[pl.ds(k * d, d), :] = z

    prior = (-0.5 * jnp.sum(z * z, axis=0, keepdims=True)
             - 0.5 * d * math.log(2.0 * math.pi))
    stats_ref[...] = jnp.concatenate([prior, ld], axis=0)   # (2, bm)


def _pick_batch_tile(m):
    """Lane-dense batch tile (multiple of 128) that divides m while keeping
    >= 2 grid steps so v7x megacore can shard the batch.  VMEM footprint even
    at bm=32768 is ~12 MiB double-buffered — well under every generation's
    scoped default."""
    for cand in (32768, 16384, 8192, 4096, 2048, 1024, 512, 256, 128):
        if m % cand == 0 and m // cand >= 2:
            return cand
    return m  # small / ragged batch: single full-extent tile


@jax.jit
def nf_forward(x, masks, w1, b1, w2, b2, u1, c1, u2, c2):
    """Forward pass of the normalizing-flow model.

    Returns (zs_flows, prior_log_prob, log_det) where zs_flows is in the
    kernel-native (K, d, m) layout (batch last / lane axis); zs_flows[k].T is
    the (m, d) latent the torch module would return for flow k.
    """
    m, d = x.shape
    K, _, hdim = w1.shape

    # Fuse + transpose the s-net / t-net parameters once (tiny XLA ops outside
    # the kernel), so each flow needs only two weight-stationary MXU pushes.
    w1t = jnp.concatenate([w1, u1], axis=2).transpose(0, 2, 1)   # (K, 2h, d)
    b1t = jnp.concatenate([b1, c1], axis=1)[..., None]           # (K, 2h, 1)
    zer = jnp.zeros((K, d, hdim), w2.dtype)
    w2t = jnp.concatenate(
        [jnp.concatenate([jnp.swapaxes(w2, 1, 2), zer], axis=2),
         jnp.concatenate([zer, jnp.swapaxes(u2, 1, 2)], axis=2)],
        axis=1)                                                  # (K, 2d, 2h)
    b2t = jnp.concatenate([b2, c2], axis=1)[..., None]           # (K, 2d, 1)
    masks_t = masks[..., None]                                   # (K, d, 1)

    x_t = x.T                                                    # (d, m)

    bm = _pick_batch_tile(m)
    nb = m // bm

    flops = 2 * m * K * (d * 2 * hdim + 2 * hdim * 2 * d)        # two matmuls
    transcendentals = m * K * (2 * hdim + d)                     # tanh + exp
    bytes_accessed = 4 * (m * d + K * d * m + 2 * m
                          + masks_t.size + w1t.size + b1t.size
                          + w2t.size + b2t.size)

    zs_flat, stats = pl.pallas_call(
        _nf_kernel,
        out_shape=(
            jax.ShapeDtypeStruct((K * d, m), jnp.float32),       # zs slab
            jax.ShapeDtypeStruct((2, m), jnp.float32),           # prior/logdet
        ),
        grid=(nb,),
        in_specs=[
            pl.BlockSpec((d, bm), lambda i: (0, i)),                  # x^T tile
            pl.BlockSpec((K, d, 1), lambda i: (0, 0, 0)),             # masks
            pl.BlockSpec((K, 2 * hdim, d), lambda i: (0, 0, 0)),      # w1t
            pl.BlockSpec((K, 2 * hdim, 1), lambda i: (0, 0, 0)),      # b1t
            pl.BlockSpec((K, 2 * d, 2 * hdim), lambda i: (0, 0, 0)),  # w2t
            pl.BlockSpec((K, 2 * d, 1), lambda i: (0, 0, 0)),         # b2t
        ],
        out_specs=(
            pl.BlockSpec((K * d, bm), lambda i: (0, i)),              # zs slab
            pl.BlockSpec((2, bm), lambda i: (0, i)),                  # stats
        ),
        compiler_params=pltpu.CompilerParams(
            dimension_semantics=("parallel",)),
        cost_estimate=pl.CostEstimate(
            flops=flops,
            transcendentals=transcendentals,
            bytes_accessed=bytes_accessed),
    )(x_t, masks_t, w1t, b1t, w2t, b2t)

    zs_flows = zs_flat.reshape(K, d, m)      # major-dim split: free, no copy
    return zs_flows, stats[0], stats[1]


def ref_forward(x, masks, w1, b1, w2, b2, u1, c1, u2, c2):
    """Pure-JAX reference (module layout: zs stacked as (K, m, d))."""
    K = w1.shape[0]
    m, d = x.shape
    z = x
    zs = []
    ld = jnp.zeros((m,), jnp.float32)
    for k in range(K):
        mask = masks[k:k + 1]
        inv = 1.0 - mask
        xa = z * mask
        s = (jnp.tanh(xa @ w1[k] + b1[k]) @ w2[k] + b2[k]) * inv
        t = (jnp.tanh(xa @ u1[k] + c1[k]) @ u2[k] + c2[k]) * inv
        z = xa + inv * (z * jnp.exp(s) + t)
        ld = ld + jnp.sum(s, axis=1)
        zs.append(z)
    prior = -0.5 * jnp.sum(z * z, axis=1) - 0.5 * d * math.log(2.0 * math.pi)
    return jnp.stack(zs), prior, ld


if __name__ == "__main__":
    M, D, H, K = 256, 8, 32, 4   # batch, dim, hidden, num flows

    key = jax.random.PRNGKey(0)
    kx, *kp = jax.random.split(key, 9)

    x = jax.random.normal(kx, (M, D), jnp.float32)

    # Alternating binary checkerboard-style masks across flows.
    base = (jnp.arange(D) % 2).astype(jnp.float32)
    masks = jnp.stack([base if k % 2 == 0 else 1.0 - base for k in range(K)])

    scale = 0.1
    w1 = scale * jax.random.normal(kp[0], (K, D, H), jnp.float32)
    b1 = scale * jax.random.normal(kp[1], (K, H), jnp.float32)
    w2 = scale * jax.random.normal(kp[2], (K, H, D), jnp.float32)
    b2 = scale * jax.random.normal(kp[3], (K, D), jnp.float32)
    u1 = scale * jax.random.normal(kp[4], (K, D, H), jnp.float32)
    c1 = scale * jax.random.normal(kp[5], (K, H), jnp.float32)
    u2 = scale * jax.random.normal(kp[6], (K, H, D), jnp.float32)
    c2 = scale * jax.random.normal(kp[7], (K, D), jnp.float32)

    zs_kdm, prior_lp, log_det = nf_forward(
        x, masks, w1, b1, w2, b2, u1, c1, u2, c2)
    jax.block_until_ready((zs_kdm, prior_lp, log_det))

    # Assemble the same outputs the torch module returns: zs is a list with
    # the input prepended, each entry (m, d).  (Transpose only here, at demo
    # size — the hot path returns the kernel-native lane-dense layout.)
    zs = [x] + [zs_kdm[k].T for k in range(K)]

    # Verify against the pure-JAX reference.
    zr, pr, lr = ref_forward(x, masks, w1, b1, w2, b2, u1, c1, u2, c2)
    assert jnp.allclose(zs_kdm.transpose(0, 2, 1), zr, atol=1e-4, rtol=1e-4)
    assert jnp.allclose(prior_lp, pr, atol=1e-4, rtol=1e-4)
    assert jnp.allclose(log_det, lr, atol=1e-4, rtol=1e-4)
    assert len(zs) == K + 1 and prior_lp.shape == (M,) and log_det.shape == (M,)
    assert zs[1].shape == (M, D)

    # TODO(synk): backward()/sample() (inverse flows + prior sampling) are not
    # implemented; only the forward pass is kernelized.
    print("KERNEL_OK")
</pallas_src>

<mosaic_0001>
module attributes {stable_mosaic.version = 11 : i64} {
  func.func @_nf_kernel(%arg0: i32, %arg1: memref<8x128xf32, #tpu.memory_space<vmem>>, %arg2: memref<4x8x1xf32, #tpu.memory_space<vmem>>, %arg3: memref<4x64x8xf32, #tpu.memory_space<vmem>>, %arg4: memref<4x64x1xf32, #tpu.memory_space<vmem>>, %arg5: memref<4x16x64xf32, #tpu.memory_space<vmem>>, %arg6: memref<4x16x1xf32, #tpu.memory_space<vmem>>, %arg7: memref<32x128xf32, #tpu.memory_space<vmem>>, %arg8: memref<2x128xf32, #tpu.memory_space<vmem>>) attributes {dimension_semantics = [#tpu.dimension_semantics<parallel>], iteration_bounds = array<i64: 2>, scalar_prefetch = 0 : i64, scratch_operands = 0 : i64, tpu.core_type = #tpu.core_type<tc>, window_params = [{transform_indices = @transform_0, window_bounds = array<i64: 8, 128>}, {pipeline_mode = #tpu.pipeline_mode<synchronous>, transform_indices = @transform_1, window_bounds = array<i64: 4, 8, 1>}, {pipeline_mode = #tpu.pipeline_mode<synchronous>, transform_indices = @transform_2, window_bounds = array<i64: 4, 64, 8>}, {pipeline_mode = #tpu.pipeline_mode<synchronous>, transform_indices = @transform_3, window_bounds = array<i64: 4, 64, 1>}, {pipeline_mode = #tpu.pipeline_mode<synchronous>, transform_indices = @transform_4, window_bounds = array<i64: 4, 16, 64>}, {pipeline_mode = #tpu.pipeline_mode<synchronous>, transform_indices = @transform_5, window_bounds = array<i64: 4, 16, 1>}, {transform_indices = @transform_6, window_bounds = array<i64: 32, 128>}, {transform_indices = @transform_7, window_bounds = array<i64: 2, 128>}]} {
    %c0 = arith.constant 0 : index
    %c0_0 = arith.constant 0 : index
    %0 = vector.load %arg1[%c0, %c0_0] : memref<8x128xf32, #tpu.memory_space<vmem>>, vector<8x128xf32>
    %cst = arith.constant 0.000000e+00 : f32
    %1 = vector.broadcast %cst : f32 to vector<1x128xf32>
    %c0_1 = arith.constant 0 : index
    %c0_2 = arith.constant 0 : index
    %c0_3 = arith.constant 0 : index
    %2 = vector.load %arg2[%c0_1, %c0_2, %c0_3] : memref<4x8x1xf32, #tpu.memory_space<vmem>>, vector<1x8x1xf32>
    %3 = vector.shape_cast %2 : vector<1x8x1xf32> to vector<8x1xf32>
    %cst_4 = arith.constant 1.000000e+00 : f32
    %4 = vector.broadcast %cst_4 : f32 to vector<8x1xf32>
    %5 = arith.subf %4, %3 : vector<8x1xf32>
    %6 = vector.broadcast %3 : vector<8x1xf32> to vector<8x128xf32>
    %7 = arith.mulf %0, %6 : vector<8x128xf32>
    %c0_5 = arith.constant 0 : index
    %c0_6 = arith.constant 0 : index
    %c0_7 = arith.constant 0 : index
    %8 = vector.load %arg3[%c0_5, %c0_6, %c0_7] : memref<4x64x8xf32, #tpu.memory_space<vmem>>, vector<1x64x8xf32>
    %9 = vector.shape_cast %8 : vector<1x64x8xf32> to vector<64x8xf32>
    %cst_8 = arith.constant dense<0.000000e+00> : vector<64x128xf32>
    %10 = tpu.matmul %9, %7, %cst_8 {dimension_numbers = #tpu.dot_dimension_numbers<[1], [0], [0], [1], [0, 0, 1, 1], [], []>} : vector<64x8xf32>, vector<8x128xf32>, vector<64x128xf32> -> vector<64x128xf32>
    %c0_9 = arith.constant 0 : index
    %c0_10 = arith.constant 0 : index
    %c0_11 = arith.constant 0 : index
    %11 = vector.load %arg4[%c0_9, %c0_10, %c0_11] : memref<4x64x1xf32, #tpu.memory_space<vmem>>, vector<1x64x1xf32>
    %12 = vector.shape_cast %11 : vector<1x64x1xf32> to vector<64x1xf32>
    %13 = vector.broadcast %12 : vector<64x1xf32> to vector<64x128xf32>
    %14 = arith.addf %10, %13 : vector<64x128xf32>
    %15 = math.tanh %14 : vector<64x128xf32>
    %c0_12 = arith.constant 0 : index
    %c0_13 = arith.constant 0 : index
    %c0_14 = arith.constant 0 : index
    %16 = vector.load %arg5[%c0_12, %c0_13, %c0_14] : memref<4x16x64xf32, #tpu.memory_space<vmem>>, vector<1x16x64xf32>
    %17 = vector.shape_cast %16 : vector<1x16x64xf32> to vector<16x64xf32>
    %cst_15 = arith.constant dense<0.000000e+00> : vector<16x128xf32>
    %18 = tpu.matmul %17, %15, %cst_15 {dimension_numbers = #tpu.dot_dimension_numbers<[1], [0], [0], [1], [0, 0, 1, 1], [], []>} : vector<16x64xf32>, vector<64x128xf32>, vector<16x128xf32> -> vector<16x128xf32>
    %c0_16 = arith.constant 0 : index
    %c0_17 = arith.constant 0 : index
    %c0_18 = arith.constant 0 : index
    %19 = vector.load %arg6[%c0_16, %c0_17, %c0_18] : memref<4x16x1xf32, #tpu.memory_space<vmem>>, vector<1x16x1xf32>
    %20 = vector.shape_cast %19 : vector<1x16x1xf32> to vector<16x1xf32>
    %21 = vector.broadcast %20 : vector<16x1xf32> to vector<16x128xf32>
    %22 = arith.addf %18, %21 : vector<16x128xf32>
    %23 = vector.extract_strided_slice %22 {offsets = [0, 0], sizes = [8, 128], strides = [1, 1]} : vector<16x128xf32> to vector<8x128xf32>
    %24 = vector.broadcast %5 : vector<8x1xf32> to vector<8x128xf32>
    %25 = arith.mulf %23, %24 : vector<8x128xf32>
    %26 = vector.extract_strided_slice %22 {offsets = [8, 0], sizes = [8, 128], strides = [1, 1]} : vector<16x128xf32> to vector<8x128xf32>
    %27 = vector.broadcast %5 : vector<8x1xf32> to vector<8x128xf32>
    %28 = arith.mulf %26, %27 : vector<8x128xf32>
    %29 = math.exp %25 : vector<8x128xf32>
    %30 = arith.mulf %0, %29 : vector<8x128xf32>
    %31 = arith.addf %30, %28 : vector<8x128xf32>
    %32 = vector.broadcast %5 : vector<8x1xf32> to vector<8x128xf32>
    %33 = arith.mulf %32, %31 : vector<8x128xf32>
    %34 = arith.addf %7, %33 : vector<8x128xf32>
    %cst_19 = arith.constant dense<0.000000e+00> : vector<128xf32>
    %35 = vector.multi_reduction <add>, %25, %cst_19 [0] : vector<8x128xf32> to vector<128xf32>
    %36 = vector.shape_cast %35 : vector<128xf32> to vector<1x128xf32>
    %37 = arith.addf %1, %36 : vector<1x128xf32>
    %c0_20 = arith.constant 0 : index
    %c0_21 = arith.constant 0 : index
    %38 = vector.load %arg7[%c0_20, %c0_21] : memref<32x128xf32, #tpu.memory_space<vmem>>, vector<8x128xf32>
    tpu.vector_store %arg7[%c0_20, %c0_21], %34 {strides = array<i32>} : memref<32x128xf32, #tpu.memory_space<vmem>>, vector<8x128xf32>,
    %c1 = arith.constant 1 : index
    %c0_22 = arith.constant 0 : index
    %c0_23 = arith.constant 0 : index
    %39 = vector.load %arg2[%c1, %c0_22, %c0_23] : memref<4x8x1xf32, #tpu.memory_space<vmem>>, vector<1x8x1xf32>
    %40 = vector.shape_cast %39 : vector<1x8x1xf32> to vector<8x1xf32>
    %cst_24 = arith.constant 1.000000e+00 : f32
    %41 = vector.broadcast %cst_24 : f32 to vector<8x1xf32>
    %42 = arith.subf %41, %40 : vector<8x1xf32>
    %43 = vector.broadcast %40 : vector<8x1xf32> to vector<8x128xf32>
    %44 = arith.mulf %34, %43 : vector<8x128xf32>
    %c1_25 = arith.constant 1 : index
    %c0_26 = arith.constant 0 : index
    %c0_27 = arith.constant 0 : index
    %45 = vector.load %arg3[%c1_25, %c0_26, %c0_27] : memref<4x64x8xf32, #tpu.memory_space<vmem>>, vector<1x64x8xf32>
    %46 = vector.shape_cast %45 : vector<1x64x8xf32> to vector<64x8xf32>
    %cst_28 = arith.constant dense<0.000000e+00> : vector<64x128xf32>
    %47 = tpu.matmul %46, %44, %cst_28 {dimension_numbers = #tpu.dot_dimension_numbers<[1], [0], [0], [1], [0, 0, 1, 1], [], []>} : vector<64x8xf32>, vector<8x128xf32>, vector<64x128xf32> -> vector<64x128xf32>
    %c1_29 = arith.constant 1 : index
    %c0_30 = arith.constant 0 : index
    %c0_31 = arith.constant 0 : index
    %48 = vector.load %arg4[%c1_29, %c0_30, %c0_31] : memref<4x64x1xf32, #tpu.memory_space<vmem>>, vector<1x64x1xf32>
    %49 = vector.shape_cast %48 : vector<1x64x1xf32> to vector<64x1xf32>
    %50 = vector.broadcast %49 : vector<64x1xf32> to vector<64x128xf32>
    %51 = arith.addf %47, %50 : vector<64x128xf32>
    %52 = math.tanh %51 : vector<64x128xf32>
    %c1_32 = arith.constant 1 : index
    %c0_33 = arith.constant 0 : index
    %c0_34 = arith.constant 0 : index
    %53 = vector.load %arg5[%c1_32, %c0_33, %c0_34] : memref<4x16x64xf32, #tpu.memory_space<vmem>>, vector<1x16x64xf32>
    %54 = vector.shape_cast %53 : vector<1x16x64xf32> to vector<16x64xf32>
    %cst_35 = arith.constant dense<0.000000e+00> : vector<16x128xf32>
    %55 = tpu.matmul %54, %52, %cst_35 {dimension_numbers = #tpu.dot_dimension_numbers<[1], [0], [0], [1], [0, 0, 1, 1], [], []>} : vector<16x64xf32>, vector<64x128xf32>, vector<16x128xf32> -> vector<16x128xf32>
    %c1_36 = arith.constant 1 : index
    %c0_37 = arith.constant 0 : index
    %c0_38 = arith.constant 0 : index
    %56 = vector.load %arg6[%c1_36, %c0_37, %c0_38] : memref<4x16x1xf32, #tpu.memory_space<vmem>>, vector<1x16x1xf32>
    %57 = vector.shape_cast %56 : vector<1x16x1xf32> to vector<16x1xf32>
    %58 = vector.broadcast %57 : vector<16x1xf32> to vector<16x128xf32>
    %59 = arith.addf %55, %58 : vector<16x128xf32>
    %60 = vector.extract_strided_slice %59 {offsets = [0, 0], sizes = [8, 128], strides = [1, 1]} : vector<16x128xf32> to vector<8x128xf32>
    %61 = vector.broadcast %42 : vector<8x1xf32> to vector<8x128xf32>
    %62 = arith.mulf %60, %61 : vector<8x128xf32>
    %63 = vector.extract_strided_slice %59 {offsets = [8, 0], sizes = [8, 128], strides = [1, 1]} : vector<16x128xf32> to vector<8x128xf32>
    %64 = vector.broadcast %42 : vector<8x1xf32> to vector<8x128xf32>
    %65 = arith.mulf %63, %64 : vector<8x128xf32>
    %66 = math.exp %62 : vector<8x128xf32>
    %67 = arith.mulf %34, %66 : vector<8x128xf32>
    %68 = arith.addf %67, %65 : vector<8x128xf32>
    %69 = vector.broadcast %42 : vector<8x1xf32> to vector<8x128xf32>
    %70 = arith.mulf %69, %68 : vector<8x128xf32>
    %71 = arith.addf %44, %70 : vector<8x128xf32>
    %cst_39 = arith.constant dense<0.000000e+00> : vector<128xf32>
    %72 = vector.multi_reduction <add>, %62, %cst_39 [0] : vector<8x128xf32> to vector<128xf32>
    %73 = vector.shape_cast %72 : vector<128xf32> to vector<1x128xf32>
    %74 = arith.addf %37, %73 : vector<1x128xf32>
    %c8 = arith.constant 8 : index
    %c0_40 = arith.constant 0 : index
    %75 = vector.load %arg7[%c8, %c0_40] : memref<32x128xf32, #tpu.memory_space<vmem>>, vector<8x128xf32>
    tpu.vector_store %arg7[%c8, %c0_40], %71 {strides = array<i32>} : memref<32x128xf32, #tpu.memory_space<vmem>>, vector<8x128xf32>,
    %c2 = arith.constant 2 : index
    %c0_41 = arith.constant 0 : index
    %c0_42 = arith.constant 0 : index
    %76 = vector.load %arg2[%c2, %c0_41, %c0_42] : memref<4x8x1xf32, #tpu.memory_space<vmem>>, vector<1x8x1xf32>
    %77 = vector.shape_cast %76 : vector<1x8x1xf32> to vector<8x1xf32>
    %cst_43 = arith.constant 1.000000e+00 : f32
    %78 = vector.broadcast %cst_43 : f32 to vector<8x1xf32>
    %79 = arith.subf %78, %77 : vector<8x1xf32>
    %80 = vector.broadcast %77 : vector<8x1xf32> to vector<8x128xf32>
    %81 = arith.mulf %71, %80 : vector<8x128xf32>
    %c2_44 = arith.constant 2 : index
    %c0_45 = arith.constant 0 : index
    %c0_46 = arith.constant 0 : index
    %82 = vector.load %arg3[%c2_44, %c0_45, %c0_46] : memref<4x64x8xf32, #tpu.memory_space<vmem>>, vector<1x64x8xf32>
    %83 = vector.shape_cast %82 : vector<1x64x8xf32> to vector<64x8xf32>
    %cst_47 = arith.constant dense<0.000000e+00> : vector<64x128xf32>
    %84 = tpu.matmul %83, %81, %cst_47 {dimension_numbers = #tpu.dot_dimension_numbers<[1], [0], [0], [1], [0, 0, 1, 1], [], []>} : vector<64x8xf32>, vector<8x128xf32>, vector<64x128xf32> -> vector<64x128xf32>
    %c2_48 = arith.constant 2 : index
    %c0_49 = arith.constant 0 : index
    %c0_50 = arith.constant 0 : index
    %85 = vector.load %arg4[%c2_48, %c0_49, %c0_50] : memref<4x64x1xf32, #tpu.memory_space<vmem>>, vector<1x64x1xf32>
    %86 = vector.shape_cast %85 : vector<1x64x1xf32> to vector<64x1xf32>
    %87 = vector.broadcast %86 : vector<64x1xf32> to vector<64x128xf32>
    %88 = arith.addf %84, %87 : vector<64x128xf32>
    %89 = math.tanh %88 : vector<64x128xf32>
    %c2_51 = arith.constant 2 : index
    %c0_52 = arith.constant 0 : index
    %c0_53 = arith.constant 0 : index
    %90 = vector.load %arg5[%c2_51, %c0_52, %c0_53] : memref<4x16x64xf32, #tpu.memory_space<vmem>>, vector<1x16x64xf32>
    %91 = vector.shape_cast %90 : vector<1x16x64xf32> to vector<16x64xf32>
    %cst_54 = arith.constant dense<0.000000e+00> : vector<16x128xf32>
    %92 = tpu.matmul %91, %89, %cst_54 {dimension_numbers = #tpu.dot_dimension_numbers<[1], [0], [0], [1], [0, 0, 1, 1], [], []>} : vector<16x64xf32>, vector<64x128xf32>, vector<16x128xf32> -> vector<16x128xf32>
    %c2_55 = arith.constant 2 : index
    %c0_56 = arith.constant 0 : index
    %c0_57 = arith.constant 0 : index
    %93 = vector.load %arg6[%c2_55, %c0_56, %c0_57] : memref<4x16x1xf32, #tpu.memory_space<vmem>>, vector<1x16x1xf32>
    %94 = vector.shape_cast %93 : vector<1x16x1xf32> to vector<16x1xf32>
    %95 = vector.broadcast %94 : vector<16x1xf32> to vector<16x128xf32>
    %96 = arith.addf %92, %95 : vector<16x128xf32>
    %97 = vector.extract_strided_slice %96 {offsets = [0, 0], sizes = [8, 128], strides = [1, 1]} : vector<16x128xf32> to vector<8x128xf32>
    %98 = vector.broadcast %79 : vector<8x1xf32> to vector<8x128xf32>
    %99 = arith.mulf %97, %98 : vector<8x128xf32>
    %100 = vector.extract_strided_slice %96 {offsets = [8, 0], sizes = [8, 128], strides = [1, 1]} : vector<16x128xf32> to vector<8x128xf32>
    %101 = vector.broadcast %79 : vector<8x1xf32> to vector<8x128xf32>
    %102 = arith.mulf %100, %101 : vector<8x128xf32>
    %103 = math.exp %99 : vector<8x128xf32>
    %104 = arith.mulf %71, %103 : vector<8x128xf32>
    %105 = arith.addf %104, %102 : vector<8x128xf32>
    %106 = vector.broadcast %79 : vector<8x1xf32> to vector<8x128xf32>
    %107 = arith.mulf %106, %105 : vector<8x128xf32>
    %108 = arith.addf %81, %107 : vector<8x128xf32>
    %cst_58 = arith.constant dense<0.000000e+00> : vector<128xf32>
    %109 = vector.multi_reduction <add>, %99, %cst_58 [0] : vector<8x128xf32> to vector<128xf32>
    %110 = vector.shape_cast %109 : vector<128xf32> to vector<1x128xf32>
    %111 = arith.addf %74, %110 : vector<1x128xf32>
    %c16 = arith.constant 16 : index
    %c0_59 = arith.constant 0 : index
    %112 = vector.load %arg7[%c16, %c0_59] : memref<32x128xf32, #tpu.memory_space<vmem>>, vector<8x128xf32>
    tpu.vector_store %arg7[%c16, %c0_59], %108 {strides = array<i32>} : memref<32x128xf32, #tpu.memory_space<vmem>>, vector<8x128xf32>,
    %c3 = arith.constant 3 : index
    %c0_60 = arith.constant 0 : index
    %c0_61 = arith.constant 0 : index
    %113 = vector.load %arg2[%c3, %c0_60, %c0_61] : memref<4x8x1xf32, #tpu.memory_space<vmem>>, vector<1x8x1xf32>
    %114 = vector.shape_cast %113 : vector<1x8x1xf32> to vector<8x1xf32>
    %cst_62 = arith.constant 1.000000e+00 : f32
    %115 = vector.broadcast %cst_62 : f32 to vector<8x1xf32>
    %116 = arith.subf %115, %114 : vector<8x1xf32>
    %117 = vector.broadcast %114 : vector<8x1xf32> to vector<8x128xf32>
    %118 = arith.mulf %108, %117 : vector<8x128xf32>
    %c3_63 = arith.constant 3 : index
    %c0_64 = arith.constant 0 : index
    %c0_65 = arith.constant 0 : index
    %119 = vector.load %arg3[%c3_63, %c0_64, %c0_65] : memref<4x64x8xf32, #tpu.memory_space<vmem>>, vector<1x64x8xf32>
    %120 = vector.shape_cast %119 : vector<1x64x8xf32> to vector<64x8xf32>
    %cst_66 = arith.constant dense<0.000000e+00> : vector<64x128xf32>
    %121 = tpu.matmul %120, %118, %cst_66 {dimension_numbers = #tpu.dot_dimension_numbers<[1], [0], [0], [1], [0, 0, 1, 1], [], []>} : vector<64x8xf32>, vector<8x128xf32>, vector<64x128xf32> -> vector<64x128xf32>
    %c3_67 = arith.constant 3 : index
    %c0_68 = arith.constant 0 : index
    %c0_69 = arith.constant 0 : index
    %122 = vector.load %arg4[%c3_67, %c0_68, %c0_69] : memref<4x64x1xf32, #tpu.memory_space<vmem>>, vector<1x64x1xf32>
    %123 = vector.shape_cast %122 : vector<1x64x1xf32> to vector<64x1xf32>
    %124 = vector.broadcast %123 : vector<64x1xf32> to vector<64x128xf32>
    %125 = arith.addf %121, %124 : vector<64x128xf32>
    %126 = math.tanh %125 : vector<64x128xf32>
    %c3_70 = arith.constant 3 : index
    %c0_71 = arith.constant 0 : index
    %c0_72 = arith.constant 0 : index
    %127 = vector.load %arg5[%c3_70, %c0_71, %c0_72] : memref<4x16x64xf32, #tpu.memory_space<vmem>>, vector<1x16x64xf32>
    %128 = vector.shape_cast %127 : vector<1x16x64xf32> to vector<16x64xf32>
    %cst_73 = arith.constant dense<0.000000e+00> : vector<16x128xf32>
    %129 = tpu.matmul %128, %126, %cst_73 {dimension_numbers = #tpu.dot_dimension_numbers<[1], [0], [0], [1], [0, 0, 1, 1], [], []>} : vector<16x64xf32>, vector<64x128xf32>, vector<16x128xf32> -> vector<16x128xf32>
    %c3_74 = arith.constant 3 : index
    %c0_75 = arith.constant 0 : index
    %c0_76 = arith.constant 0 : index
    %130 = vector.load %arg6[%c3_74, %c0_75, %c0_76] : memref<4x16x1xf32, #tpu.memory_space<vmem>>, vector<1x16x1xf32>
    %131 = vector.shape_cast %130 : vector<1x16x1xf32> to vector<16x1xf32>
    %132 = vector.broadcast %131 : vector<16x1xf32> to vector<16x128xf32>
    %133 = arith.addf %129, %132 : vector<16x128xf32>
    %134 = vector.extract_strided_slice %133 {offsets = [0, 0], sizes = [8, 128], strides = [1, 1]} : vector<16x128xf32> to vector<8x128xf32>
    %135 = vector.broadcast %116 : vector<8x1xf32> to vector<8x128xf32>
    %136 = arith.mulf %134, %135 : vector<8x128xf32>
    %137 = vector.extract_strided_slice %133 {offsets = [8, 0], sizes = [8, 128], strides = [1, 1]} : vector<16x128xf32> to vector<8x128xf32>
    %138 = vector.broadcast %116 : vector<8x1xf32> to vector<8x128xf32>
    %139 = arith.mulf %137, %138 : vector<8x128xf32>
    %140 = math.exp %136 : vector<8x128xf32>
    %141 = arith.mulf %108, %140 : vector<8x128xf32>
    %142 = arith.addf %141, %139 : vector<8x128xf32>
    %143 = vector.broadcast %116 : vector<8x1xf32> to vector<8x128xf32>
    %144 = arith.mulf %143, %142 : vector<8x128xf32>
    %145 = arith.addf %118, %144 : vector<8x128xf32>
    %cst_77 = arith.constant dense<0.000000e+00> : vector<128xf32>
    %146 = vector.multi_reduction <add>, %136, %cst_77 [0] : vector<8x128xf32> to vector<128xf32>
    %147 = vector.shape_cast %146 : vector<128xf32> to vector<1x128xf32>
    %148 = arith.addf %111, %147 : vector<1x128xf32>
    %c24 = arith.constant 24 : index
    %c0_78 = arith.constant 0 : index
    %149 = vector.load %arg7[%c24, %c0_78] : memref<32x128xf32, #tpu.memory_space<vmem>>, vector<8x128xf32>
    tpu.vector_store %arg7[%c24, %c0_78], %145 {strides = array<i32>} : memref<32x128xf32, #tpu.memory_space<vmem>>, vector<8x128xf32>,
    %150 = arith.mulf %145, %145 : vector<8x128xf32>
    %cst_79 = arith.constant dense<0.000000e+00> : vector<128xf32>
    %151 = vector.multi_reduction <add>, %150, %cst_79 [0] : vector<8x128xf32> to vector<128xf32>
    %152 = vector.shape_cast %151 : vector<128xf32> to vector<1x128xf32>
    %cst_80 = arith.constant -5.000000e-01 : f32
    %153 = vector.broadcast %cst_80 : f32 to vector<1x128xf32>
    %154 = arith.mulf %153, %152 : vector<1x128xf32>
    %cst_81 = arith.constant 7.35150814 : f32
    %155 = vector.broadcast %cst_81 : f32 to vector<1x128xf32>
    %156 = arith.subf %154, %155 : vector<1x128xf32>
    %157 = tpu.concatenate %156, %148 in 0 : vector<1x128xf32>, vector<1x128xf32> -> vector<2x128xf32>
    %c0_82 = arith.constant 0 : index
    %c0_83 = arith.constant 0 : index
    %158 = vector.load %arg8[%c0_82, %c0_83] : memref<2x128xf32, #tpu.memory_space<vmem>>, vector<2x128xf32>
    tpu.vector_store %arg8[%c0_82, %c0_83], %157 {strides = array<i32>} : memref<2x128xf32, #tpu.memory_space<vmem>>, vector<2x128xf32>,
    return
  }
  func.func @transform_0(%arg0: i32) -> (i32, i32) {
    %c0_i32 = arith.constant 0 : i32
    %c0_i32_0 = arith.constant 0 : i32
    return %c0_i32, %arg0 : i32, i32
  }
  func.func @transform_1(%arg0: i32) -> (i32, i32, i32) {
    %c0_i32 = arith.constant 0 : i32
    %c0_i32_0 = arith.constant 0 : i32
    %c0_i32_1 = arith.constant 0 : i32
    %c0_i32_2 = arith.constant 0 : i32
    return %c0_i32, %c0_i32_0, %c0_i32_1 : i32, i32, i32
  }
  func.func @transform_2(%arg0: i32) -> (i32, i32, i32) {
    %c0_i32 = arith.constant 0 : i32
    %c0_i32_0 = arith.constant 0 : i32
    %c0_i32_1 = arith.constant 0 : i32
    %c0_i32_2 = arith.constant 0 : i32
    return %c0_i32, %c0_i32_0, %c0_i32_1 : i32, i32, i32
  }
  func.func @transform_3(%arg0: i32) -> (i32, i32, i32) {
    %c0_i32 = arith.constant 0 : i32
    %c0_i32_0 = arith.constant 0 : i32
    %c0_i32_1 = arith.constant 0 : i32
    %c0_i32_2 = arith.constant 0 : i32
    return %c0_i32, %c0_i32_0, %c0_i32_1 : i32, i32, i32
  }
  func.func @transform_4(%arg0: i32) -> (i32, i32, i32) {
    %c0_i32 = arith.constant 0 : i32
    %c0_i32_0 = arith.constant 0 : i32
    %c0_i32_1 = arith.constant 0 : i32
    %c0_i32_2 = arith.constant 0 : i32
    return %c0_i32, %c0_i32_0, %c0_i32_1 : i32, i32, i32
  }
  func.func @transform_5(%arg0: i32) -> (i32, i32, i32) {
    %c0_i32 = arith.constant 0 : i32
    %c0_i32_0 = arith.constant 0 : i32
    %c0_i32_1 = arith.constant 0 : i32
    %c0_i32_2 = arith.constant 0 : i32
    return %c0_i32, %c0_i32_0, %c0_i32_1 : i32, i32, i32
  }
  func.func @transform_6(%arg0: i32) -> (i32, i32) {
    %c0_i32 = arith.constant 0 : i32
    %c0_i32_0 = arith.constant 0 : i32
    return %c0_i32, %arg0 : i32, i32
  }
  func.func @transform_7(%arg0: i32) -> (i32, i32) {
    %c0_i32 = arith.constant 0 : i32
    %c0_i32_0 = arith.constant 0 : i32
    return %c0_i32, %arg0 : i32, i32
  }
}

</mosaic_0001>

<bundles_post_ra>
// kernel: nf_forward.1
= control target key start
LH: loop header
LB: loop body
LE: loop exit
PB: predicated region body
PF: predicated region fallthrough
CT: control target
= control target key end

     0   :  { %13 = vsyncpa [#allocation3], 0  ;;  %s2765_s0 = inlined_call_operand.vmem [shape: f32[8,256], index: 0, kind: input, shape index: {}]   ;;  %s2766_s1 = inlined_call_operand.vmem [shape: f32[4,8,1], index: 1, kind: input, shape index: {}]   ;;  %s2767_s2 = inlined_call_operand.vmem [shape: f32[4,64,8], index: 2, kind: input, shape index: {}]   ;;  %s2768_s3 = inlined_call_operand.vmem [shape: f32[4,64,1], index: 3, kind: input, shape index: {}]   ;;  %s2769_s4 = inlined_call_operand.vmem [shape: f32[4,16,64], index: 4, kind: input, shape index: {}]   ;;  %s2770_s5 = inlined_call_operand.vmem [shape: f32[4,16,1], index: 5, kind: input, shape index: {}]   ;;  %s2771_s6 = inlined_call_operand.hbm [shape: f32[32,256], index: 6, kind: output, shape index: {0}]   ;;  %s2772_s7 = inlined_call_operand.vmem [shape: f32[2,256], index: 7, kind: output, shape index: {1}]  }
   0x1   :  { %15 = vsyncpa [#allocation3 + $0x1], 0  ;;  %s2302_s24 = smov 0   ;;  %s2304_s25 = smov 0  }
   0x2   :  { %s2306_s26 = smov 0   ;;  %s2308_s27 = smov 0  }
   0x3 LB: > { %s2323_s28 = sadd.s32 4294967295, %s2255_s27   ;;  %s1689_s29 = sadd.s32 4294967294, %s2255_s27   ;;  %s2255_s27 = sphi %s2308_s27, %s2778_s27   ;;  %s2251_s26 = sphi %s2306_s26, %s2777_s26   ;;  %s2247_s25 = sphi %s2304_s25, %s2776_s25   ;;  %s2243_s24 = sphi %s2302_s24, %s2775_s24  }
   0x4   : > { %s2327_s30 = sadd.s32 1, %s2255_s27   ;;  %s159_s8 = sadd.s32 1, %s2251_s26 }
   0x5   : > { %s156_s9 = ssub.s32 %s2255_s27, %s2327_s30  ;;  %p169_p0 = scmp.ne.s32.totalorder %s2251_s26, %s2247_s25 }
   0x6   : > { %p157_p1 = scmp.eq.s32.totalorder %s156_s9, 0  ;;  %p170_p2 = scmp.eq.s32.totalorder %s2323_s28, 1 }
   0x7   : > { %p175_p3 = scmp.ne.s32.totalorder %s2247_s25, %s2243_s24  ;;  %p176_p4 = scmp.eq.s32.totalorder %s1689_s29, 1 }
   0x8   : > { %s2338_s10 = scalar_select %p157_p1, %s2251_s26, %s159_s8  }
   0x9   : > { %p2340_p5 = por %p170_p2, %p169_p0  ;;  %p2344_p6 = por %p176_p4, %p175_p3 }
   0xa   : > { %p1692_p7 = scmp.ge.s32.totalorder %s2255_s27, 1  ;;  %p242_p8 = scmp.lt.s32.totalorder %s2255_s27, 3 }
   0xc   : > { %p243_p9 = pnand %p1692_p7, %p242_p8 }
   0xd   : > { %v286_v0 = vld [vmem:[%s2766_s1] sm:$0xff] (!%p243_p9)  ;;  %v2257_v1 = vmov (!%p243_p9), 0   ;;  %vm350_vm0 = vcmask (!%p243_p9), 64512   ;;  %v303_v3 = vld [vmem:[%s2768_s3 + $0x8] sm:$0xff] (!%p243_p9)  ;;  %v305_v4 = vld [vmem:[%s2768_s3 + $0x18] sm:$0xff] (!%p243_p9)  ;;  %p277_p10 = scmp.lt.s32.totalorder (!%p243_p9), %s2323_s28, 1 }
   0xe   : > { %246 = sbr.rel (%p243_p9) target bundleno = 2118 (0x846), region = 44  ;;  %2119 = vset.pattern.permute.xlu0 (!%p243_p9), %v2257_v1  ;;  %2120 = vset.pattern.permute.xlu1 (!%p243_p9), %v2257_v1  ;;  %v302_v2 = vld [vmem:[%s2768_s3] sm:$0xff] (!%p243_p9)  ;;  %v304_v6 = vld [vmem:[%s2768_s3 + $0x10] sm:$0xff] (!%p243_p9)  ;;  %v307_v7 = vld [vmem:[%s2768_s3 + $0x28] sm:$0xff] (!%p243_p9)  ;;  %v287_v11 = vsub.f32 (!%p243_p9), 1.0, %v286_v0  ;;  %vm502_vm1 = vcmask (!%p243_p9), 523264  }
   0xf   : > { %290 = vperm.xlu0 (!%p243_p9), %2119, %v286_v0   ;;  %317 = vperm.xlu1 (!%p243_p9), %2120, %v303_v3   ;;  %v294_v5 = vld [vmem:[%s2767_s2] sm:$0xff] (!%p243_p9)  ;;  %v309_v9 = vld [vmem:[%s2768_s3 + $0x38] sm:$0xff] (!%p243_p9)  ;;  %v308_v10 = vld [vmem:[%s2768_s3 + $0x30] sm:$0xff] (!%p243_p9)  ;;  %s268_s17 = sand.u32 (!%p243_p9), 1, %s2247_s25   ;;  %s1801_s29 = sshll.u32 (!%p243_p9), %s2323_s28, 7 }
  0x10   : > { %1882 = vmatprep.mubr.msk.f32.mxu0 (!%p243_p9), %vm350_vm0, %v294_v5  ;;  %v306_v8 = vld [vmem:[%s2768_s3 + $0x20] sm:$0xff] (!%p243_p9)  ;;  %v1706_v13 = vld [vmem:[%s2766_s1 + $0x8] sm:$0xff] (!%p243_p9)  ;;  %v1718_v17 = vld [vmem:[%s2768_s3 + $0x58] sm:$0xff] (!%p243_p9)  ;;  %s1693_s18 = sshll.u32 (!%p243_p9), %s268_s17, 5  ;;  %s2712_s14 = scalar_lea.hbm (!%p243_p9), %s2771_s6, %s1801_s29 }
  0x11   : > { %v490_v12 = vld [vmem:[%s2770_s5] sm:$0xff] (!%p243_p9)  ;;  %v491_v14 = vld [vmem:[%s2770_s5 + $0x8] sm:$0xff] (!%p243_p9)  ;;  %v1717_v18 = vld [vmem:[%s2768_s3 + $0x50] sm:$0xff] (!%p243_p9)  ;;  %v607_v23 = vsub.f32 (!%p243_p9), 1.0, %v1706_v13  ;;  %s2720_s15 = scalar_lea.sflag (!%p243_p9), [#allocation3], %s268_s17  ;;  %s2258_s16 = smov (!%p243_p9), [#allocation2]  }
  0x12   : > { %v1716_v15 = vld [vmem:[%s2768_s3 + $0x48] sm:$0xff] (!%p243_p9)  ;;  %v1715_v16 = vld [vmem:[%s2768_s3 + $0x40] sm:$0xff] (!%p243_p9)  ;;  %v1722_v21 = vld [vmem:[%s2768_s3 + $0x78] sm:$0xff] (!%p243_p9) }
  0x13   : > { %312 = vperm.xlu0 (!%p243_p9), %2119, %v302_v2   ;;  %322 = vperm.xlu1 (!%p243_p9), %2120, %v304_v6   ;;  %v1720_v19 = vld [vmem:[%s2768_s3 + $0x68] sm:$0xff] (!%p243_p9)  ;;  %v1719_v20 = vld [vmem:[%s2768_s3 + $0x60] sm:$0xff] (!%p243_p9)  ;;  %v1721_v22 = vld [vmem:[%s2768_s3 + $0x70] sm:$0xff] (!%p243_p9) }
  0x14   : > { %v1733_v24 = vld [vmem:[%s2770_s5 + $0x10] sm:$0xff] (!%p243_p9)  ;;  %v1734_v26 = vld [vmem:[%s2770_s5 + $0x18] sm:$0xff] (!%p243_p9)  ;;  %v1747_v27 = vld [vmem:[%s2768_s3 + $0x88] sm:$0xff] (!%p243_p9) }
  0x15   : > { %v1737_v25 = vld [vmem:[%s2766_s1 + $0x10] sm:$0xff]  ;;  %v1746_v28 = vld [vmem:[%s2768_s3 + $0x80] sm:$0xff]  ;;  %v1749_v29 = vld [vmem:[%s2768_s3 + $0x98] sm:$0xff]  ;;  %s2488_s19 = scalar_select %p277_p10, %s2323_s28, 1 }
  0x16   : > { %v1748_v30 = vld [vmem:[%s2768_s3 + $0x90] sm:$0xff]  ;;  %v1751_v31 = vld [vmem:[%s2768_s3 + $0xa8] sm:$0xff]  ;;  %v1750_v32 = vld [vmem:[%s2768_s3 + $0xa0] sm:$0xff]  ;;  %v929_v35 = vsub.f32 1.0, %v1737_v25 }
  0x17   : > { %327 = vperm.xlu0 %2119, %v305_v4   ;;  %332 = vperm.xlu1 %2120, %v306_v8   ;;  %v1753_v33 = vld [vmem:[%s2768_s3 + $0xb8] sm:$0xff]  ;;  %v1752_v34 = vld [vmem:[%s2768_s3 + $0xb0] sm:$0xff]  ;;  %v1764_v36 = vld [vmem:[%s2770_s5 + $0x20] sm:$0xff]  ;;  %s1694_s20 = sshll.u32 %s2488_s19, 3 }
  0x18   : > { %v1768_v37 = vld [vmem:[%s2766_s1 + $0x18] sm:$0xff]  ;;  %v1765_v38 = vld [vmem:[%s2770_s5 + $0x28] sm:$0xff]  ;;  %v1777_v40 = vld [vmem:[%s2768_s3 + $0xc0] sm:$0xff]  ;;  %s280_s23 = scalar_lea.vmem %s2765_s0, %s1694_s20  ;;  %s2551_s20 = scalar_lea.vmem [#allocation2], %s1693_s18 }
  0x19   : > { %v1778_v39 = vld [vmem:[%s2768_s3 + $0xc8] sm:$0xff]  ;;  %v1780_v41 = vld [vmem:[%s2768_s3 + $0xd8] sm:$0xff]  ;;  %v1779_v42 = vld [vmem:[%s2768_s3 + $0xd0] sm:$0xff]  ;;  %v1251_v47 = vsub.f32 1.0, %v1768_v37  ;;  %s1600_s8 = sshll.u32 %s2551_s20, 4  ;;  %s2197_s18 = sshll.u32 %s2258_s16, 4  ;;  %s2714_s8 = int_to_ptr.vmem [resolvable:$true] %s1600_s8  ;;  %s2198_s18 = int_to_ptr.vmem [resolvable:$false] %s2197_s18 }
  0x1a   : > { %v1782_v43 = vld [vmem:[%s2768_s3 + $0xe8] sm:$0xff]  ;;  %v1781_v44 = vld [vmem:[%s2768_s3 + $0xe0] sm:$0xff]  ;;  %v1784_v45 = vld [vmem:[%s2768_s3 + $0xf8] sm:$0xff]  ;;  %s2193_s28 = scalar_lea.vmem %s2714_s8, 512  ;;  %s2199_s21 = scalar_lea.vmem %s2198_s18, 1024 }
  0x1b   : > { %337 = vperm.xlu0 %2119, %v307_v7   ;;  %342 = vperm.xlu1 %2120, %v308_v10   ;;  %v1783_v46 = vld [vmem:[%s2768_s3 + $0xf0] sm:$0xff]  ;;  %v1796_v49 = vld [vmem:[%s2770_s5 + $0x38] sm:$0xff]  ;;  %v2494_v50 = vld [vmem:[%s280_s23] sm:$0xff]  ;;  %p2194_p11 = scmp.ne.s32.totalorder %s2714_s8, %s2193_s28  ;;  %p2200_p0 = scmp.lt.s32.totalorder %s2714_s8, %s2198_s18 }
  0x1c   : > { %v1795_v48 = vld [vmem:[%s2770_s5 + $0x30] sm:$0xff]  ;;  %v295_v53 = vld [vmem:[%s2767_s2 + $0x8] sm:$0xff]  ;;  %v297_v55 = vld [vmem:[%s2767_s2 + $0x18] sm:$0xff]  ;;  %p2201_p1 = scmp.lt.s32.totalorder %s2199_s21, %s2193_s28 }
  0x1d   : > { %v296_v54 = vld [vmem:[%s2767_s2 + $0x10] sm:$0xff]  ;;  %v298_v56 = vld [vmem:[%s2767_s2 + $0x20] sm:$0xff]  ;;  %v299_v57 = vld [vmem:[%s2767_s2 + $0x28] sm:$0xff]  ;;  %p2195_p12 = pnand %p2194_p11, %p2340_p5 }
  0x1e   : > { %v300_v58 = vld [vmem:[%s2767_s2 + $0x30] sm:$0xff]  ;;  %v301_v59 = vld [vmem:[%s2767_s2 + $0x38] sm:$0xff]  ;;  %v488_v60 = vld [vmem:[%s2769_s4] sm:$0xff]  ;;  %p2202_p2 = por %p2201_p1, %p2200_p0 }
  0x1f   : > { %347 = vperm.xlu0 %2119, %v309_v9   ;;  %494 = vperm.xlu1 %2120, %v490_v12   ;;  %p2196_p13 = pneg %p2195_p12 }
  0x20   : > { %1910 = vmatprep.mubr.msk.f32.mxu1 %vm502_vm1, %v488_v60 }
  0x21   : > { %p2203_p3 = pnand %p2202_p2, %p2196_p13 }
  0x23   : > { %586 = vperm.xlu0 %2119, %v287_v11   ;;  %499 = vperm.xlu1 %2120, %v491_v14  }
  0x27   : > { %610 = vperm.xlu0 %2119, %v1706_v13   ;;  %634 = vperm.xlu1 %2120, %v1715_v16  }
  0x2b   : > { %639 = vperm.xlu0 %2119, %v1716_v15   ;;  %644 = vperm.xlu1 %2120, %v1717_v18  }
  0x2f   : > { %649 = vperm.xlu0 %2119, %v1718_v17   ;;  %654 = vperm.xlu1 %2120, %v1719_v20  }
  0x33   : > { %659 = vperm.xlu0 %2119, %v1720_v19   ;;  %664 = vperm.xlu1 %2120, %v1721_v22  }
  0x37   : > { %669 = vperm.xlu0 %2119, %v1722_v21   ;;  %817 = vperm.xlu1 %2120, %v1733_v24  }
  0x3b   : > { %908 = vperm.xlu0 %2119, %v607_v23   ;;  %822 = vperm.xlu1 %2120, %v1734_v26  }
  0x3f   : > { %932 = vperm.xlu0 %2119, %v1737_v25   ;;  %956 = vperm.xlu1 %2120, %v1746_v28  }
  0x43   : > { %961 = vperm.xlu0 %2119, %v1747_v27   ;;  %966 = vperm.xlu1 %2120, %v1748_v30  }
  0x47   : > { %971 = vperm.xlu0 %2119, %v1749_v29   ;;  %976 = vperm.xlu1 %2120, %v1750_v32  }
  0x4b   : > { %981 = vperm.xlu0 %2119, %v1751_v31   ;;  %986 = vperm.xlu1 %2120, %v1752_v34   ;;  %v1707_v34 = vld [vmem:[%s2767_s2 + $0x40] sm:$0xff] }
  0x4f   : > { %991 = vperm.xlu0 %2119, %v1753_v33   ;;  %1139 = vperm.xlu1 %2120, %v1764_v36   ;;  %v489_v33 = vld [vmem:[%s2769_s4 + $0x8] sm:$0xff] }
  0x53   : > { %1230 = vperm.xlu0 %2119, %v929_v35   ;;  %1144 = vperm.xlu1 %2120, %v1765_v38  }
  0x57   : > { %1254 = vperm.xlu0 %2119, %v1768_v37   ;;  %1278 = vperm.xlu1 %2120, %v1777_v40  }
  0x5b   : > { %1283 = vperm.xlu0 %2119, %v1778_v39   ;;  %1288 = vperm.xlu1 %2120, %v1779_v42  }
  0x5f   : > { %1293 = vperm.xlu0 %2119, %v1780_v41   ;;  %1298 = vperm.xlu1 %2120, %v1781_v44  }
  0x63   : > { %1303 = vperm.xlu0 %2119, %v1782_v43   ;;  %1308 = vperm.xlu1 %2120, %v1783_v46  }
  0x67   : > { %1313 = vperm.xlu0 %2119, %v1784_v45   ;;  %1461 = vperm.xlu1 %2120, %v1795_v48  }
  0x6b   : > { %1552 = vperm.xlu0 %2119, %v1251_v47   ;;  %1466 = vperm.xlu1 %2120, %v1796_v49  }
  0x8e   : > { %v291_v51 = vpop.permute.xlu0 %290  ;;  %v318_v62 = vpop.permute.xlu1 %317 }
  0x8f   : > { %v2497_v52 = vmul.f32 %v291_v51, %v2494_v50 }
  0x91   : > { %1880 = vmatprep.subr.mxu0 %v2497_v52 }
  0x92   : > { %1881 = vmatpush3.msra.mxu0 %v2497_v52  ;;  %v313_v61 = vpop.permute.xlu0 %312  ;;  %v323_v1 = vpop.permute.xlu1 %322 }
  0x93   : > { %1883 = vmatmul.mubr.msk.f32.vlgmr.msra.gmra.mrb[0].mxu0 %vm350_vm0, %v295_v53 }
  0x94   : > { %1885 = vmatprep.mubr.msk.f32.mxu0 %vm350_vm0, %v296_v54  ;;  %v1710_v54 = vld [vmem:[%s2767_s2 + $0x58] sm:$0xff] }
  0x96   : > { %v328_v63 = vpop.permute.xlu0 %327  ;;  %v333_v10 = vpop.permute.xlu1 %332 }
  0x97   : > { %1886 = vmatmul.mubr.msk.f32.gmra.mrb[2].mxu0 %vm350_vm0, %v297_v55  ;;  %v1711_v55 = vld [vmem:[%s2767_s2 + $0x60] sm:$0xff] }
  0x98   : > { %1888 = vmatprep.mubr.msk.f32.mxu0 %vm350_vm0, %v298_v56  ;;  %v1712_v56 = vld [vmem:[%s2767_s2 + $0x68] sm:$0xff] }
  0x9a   : > { %v338_v8 = vpop.permute.xlu0 %337  ;;  %v343_v18 = vpop.permute.xlu1 %342 }
  0x9b   : > { %1889 = vmatmul.mubr.msk.f32.gmra.mrb[4].mxu0 %vm350_vm0, %v299_v57  ;;  %v1713_v57 = vld [vmem:[%s2767_s2 + $0x70] sm:$0xff] }
  0x9c   : > { %1891 = vmatprep.mubr.msk.f32.mxu0 %vm350_vm0, %v300_v58  ;;  %v1714_v58 = vld [vmem:[%s2767_s2 + $0x78] sm:$0xff] }
  0x9e   : > { %v348_v15 = vpop.permute.xlu0 %347  ;;  %v495_v36 = vpop.permute.xlu1 %494 }
  0x9f   : > { %1892 = vmatmul.mubr.msk.f32.gmra.mrb[6].mxu0 %vm350_vm0, %v301_v59  ;;  %v1731_v59 = vld [vmem:[%s2769_s4 + $0x10] sm:$0xff] }
  0xa0   : > { %1915 = vmatprep.mubr.msk.f32.mxu0 %vm350_vm0, %v1707_v34 }
  0xa2   : > { %v587_v39 = vpop.permute.xlu0 %586  ;;  %v500_v42 = vpop.permute.xlu1 %499 }
  0xa6   : > { %v611_v51 = vpop.permute.xlu0 %610 }
  0xaa   : > { %v640_v60 = vpop.permute.xlu0 %639 }
 0x166   : > { %v1884_v0 = vpop.f32.mrb[0].mxu0 }
 0x167   : > { %v447_v2 = vadd.f32 %v1884_v0, %v318_v62  ;;  %v441_v3 = vpop.f32.mrb[1].mxu0  ;;  %v650_v62 = vpop.permute.xlu0 %649 }
 0x168   : > { %v442_v4 = vadd.f32 %v441_v3, %v313_v61  ;;  %v635_v61 = vpop.permute.xlu1 %634 }
 0x169   : > { %2121 = vtanh.f32 %v447_v2 }
 0x16a   : > { %2123 = vtanh.f32 %v442_v4  ;;  %v1887_v5 = vpop.f32.mrb[2].mxu0 }
 0x16b   : > { %v457_v6 = vadd.f32 %v1887_v5, %v328_v63  ;;  %v451_v7 = vpop.f32.mrb[3].mxu0 }
 0x16c   : > { %v452_v9 = vadd.f32 %v451_v7, %v323_v1  ;;  %v645_v0 = vpop.permute.xlu1 %644  ;;  %v660_v7 = vpop.permute.xlu0 %659 }
 0x16d   : > { %2125 = vtanh.f32 %v457_v6 }
 0x16e   : > { %2127 = vtanh.f32 %v452_v9  ;;  %v1890_v11 = vpop.f32.mrb[4].mxu0 }
 0x16f   : > { %v467_v12 = vadd.f32 %v1890_v11, %v338_v8  ;;  %v461_v13 = vpop.f32.mrb[5].mxu0 }
 0x170   : > { %v462_v14 = vadd.f32 %v461_v13, %v333_v10  ;;  %v655_v9 = vpop.permute.xlu1 %654 }
 0x171   : > { %2129 = vtanh.f32 %v467_v12 }
 0x172   : > { %2131 = vtanh.f32 %v462_v14  ;;  %v1893_v16 = vpop.f32.mrb[6].mxu0  ;;  %v670_v14 = vpop.permute.xlu0 %669 }
 0x173   : > { %v2122_v17 = vpop.eup %2121  ;;  %v477_v19 = vadd.f32 %v1893_v16, %v348_v15  ;;  %v471_v20 = vpop.f32.mrb[7].mxu0 }
 0x174   : > { %v2124_v21 = vpop.eup %2123  ;;  %v472_v22 = vadd.f32 %v471_v20, %v343_v18 }
 0x175   : > { %2133 = vtanh.f32 %v477_v19  ;;  %v2012_v23 = vpack.c.bf16 %v2122_v17, %v2124_v21  ;;  %v665_v17 = vpop.permute.xlu1 %664 }
 0x176   : > { %2135 = vtanh.f32 %v472_v22 }
 0x177   : > { %v2126_v24 = vpop.eup %2125  ;;  %2013 = vmatprep.subr.bf16.mxu1 %v2012_v23 }
 0x178   : > { %v2128_v25 = vpop.eup %2127  ;;  %2015 = vmatpush3.bf16.msra.mxu1 %v2012_v23 }
 0x179   : > { %v2016_v26 = vpack.c.bf16 %v2126_v24, %v2128_v25 }
 0x17b   : > { %v2130_v27 = vpop.eup %2129  ;;  %2017 = vmatprep.subr.bf16.mxu1 %v2016_v26 }
 0x17c   : > { %v2132_v28 = vpop.eup %2131  ;;  %2019 = vmatpush3.bf16.msra.mxu1 %v2016_v26 }
 0x17d   : > { %v2020_v29 = vpack.c.bf16 %v2130_v27, %v2132_v28 }
 0x17f   : > { %v2134_v30 = vpop.eup %2133  ;;  %2021 = vmatprep.subr.bf16.mxu1 %v2020_v29 }
 0x180   : > { %v2136_v31 = vpop.eup %2135  ;;  %2023 = vmatpush3.bf16.msra.mxu1 %v2020_v29 }
 0x181   : > { %v2024_v32 = vpack.c.bf16 %v2134_v30, %v2136_v31 }
 0x183   : > { %2025 = vmatprep.subr.bf16.mxu1 %v2024_v32 }
 0x184   : > { %2027 = vmatpush3.bf16.msra.mxu1 %v2024_v32  ;;  %v1732_v32 = vld [vmem:[%s2769_s4 + $0x18] sm:$0xff] }
 0x187   : > { %1911 = vmatmul.mubr.msk.f32.vlgmr.msra.gmra.mrb[0].mxu1 %vm502_vm1, %v489_v33  ;;  %v1738_v33 = vld [vmem:[%s2767_s2 + $0x80] sm:$0xff] }
 0x188   : > { %1943 = vmatprep.mubr.msk.f32.mxu1 %vm502_vm1, %v1731_v59 }
 0x25a   : > { %v1912_v35 = vpop.f32.mrb[0].mxu1 }
 0x25b   : > { %v575_v37 = vpop.f32.mrb[1].mxu1  ;;  %v581_v43 = vadd.f32 %v1912_v35, %v500_v42 }
 0x25c   : > { %v576_v38 = vadd.f32 %v575_v37, %v495_v36  ;;  %v818_v37 = vpop.permute.xlu1 %817 }
 0x25d   : > { %v590_v45 = vmul.f32 %v587_v39, %v581_v43 }
 0x25e   : > { %v2541_v40 = vmul.f32 %v587_v39, %v576_v38 }
 0x260   : > { %v591_v41 = vmul.f32 1.442695, %v2541_v40  ;;  %v597_v34 = vrot.slane %v2541_v40, 4 }
 0x262   : > { %2137 = vpow2.f32 %v591_v41  ;;  %v598_v35 = vadd.f32 %v597_v34, %v2541_v40  ;;  %v909_v41 = vpop.permute.xlu0 %908 }
 0x264   : > { %v599_v42 = vrot.slane %v598_v35, 2 }
 0x26c   : > { %v2138_v44 = vpop.eup %2137 }
 0x26d   : > { %v593_v46 = vmul.f32 %v2138_v44, %v2494_v50  ;;  %v1708_v50 = vld [vmem:[%s2767_s2 + $0x48] sm:$0xff] }
 0x26f   : > { %v594_v47 = vadd.f32 %v593_v46, %v590_v45  ;;  %v600_v46 = vadd.f32 %v599_v42, %v598_v35 }
 0x271   : > { %v595_v48 = vmul.f32 %v594_v47, %v587_v39 }
 0x273   : > { %v2549_v49 = vadd.f32 %v595_v48, %v2497_v52  ;;  %v1709_v52 = vld [vmem:[%s2767_s2 + $0x50] sm:$0xff] }
 0x275   : > { %604 = vst [vmem:[%s2551_s20] sm:$0xff] %v2549_v49  ;;  %v2556_v53 = vmul.f32 %v611_v51, %v2549_v49  ;;  %v601_v51 = vrot.slane %v600_v46, 1 }
 0x277   : > { %1913 = vmatprep.subr.mxu0 %v2556_v53  ;;  %v602_v40 = vadd.f32 %v601_v51, %v600_v46  ;;  %v1769_v46 = vld [vmem:[%s2767_s2 + $0xc0] sm:$0xff] }
 0x278   : > { %1914 = vmatpush3.msra.mxu0 %v2556_v53 }
 0x279   : > { %1916 = vmatmul.mubr.msk.f32.vlgmr.msra.gmra.mrb[8].mxu0 %vm350_vm0, %v1708_v50 }
 0x27a   : > { %1918 = vmatprep.mubr.msk.f32.mxu0 %vm350_vm0, %v1709_v52  ;;  %v823_v52 = vpop.permute.xlu1 %822 }
 0x27d   : > { %1919 = vmatmul.mubr.msk.f32.gmra.mrb[10].mxu0 %vm350_vm0, %v1710_v54 }
 0x27e   : > { %1921 = vmatprep.mubr.msk.f32.mxu0 %vm350_vm0, %v1711_v55 }
 0x281   : > { %1922 = vmatmul.mubr.msk.f32.gmra.mrb[12].mxu0 %vm350_vm0, %v1712_v56 }
 0x282   : > { %1924 = vmatprep.mubr.msk.f32.mxu0 %vm350_vm0, %v1713_v57 }
 0x285   : > { %1925 = vmatmul.mubr.msk.f32.gmra.mrb[14].mxu0 %vm350_vm0, %v1714_v58 }
 0x286   : > { %1948 = vmatprep.mubr.msk.f32.mxu0 %vm350_vm0, %v1738_v33 }
 0x34c   : > { %v1917_v63 = vpop.f32.mrb[8].mxu0 }
 0x34d   : > { %v768_v1 = vadd.f32 %v1917_v63, %v640_v60  ;;  %v762_v2 = vpop.f32.mrb[9].mxu0 }
 0x34e   : > { %v763_v3 = vadd.f32 %v762_v2, %v635_v61  ;;  %v1739_v2 = vld [vmem:[%s2767_s2 + $0x88] sm:$0xff] }
 0x34f   : > { %2139 = vtanh.f32 %v768_v1 }
 0x350   : > { %2141 = vtanh.f32 %v763_v3  ;;  %v1920_v4 = vpop.f32.mrb[10].mxu0  ;;  %v1742_v3 = vld [vmem:[%s2767_s2 + $0xa0] sm:$0xff] }
 0x351   : > { %v778_v5 = vadd.f32 %v1920_v4, %v650_v62  ;;  %v772_v6 = vpop.f32.mrb[11].mxu0  ;;  %v1743_v4 = vld [vmem:[%s2767_s2 + $0xa8] sm:$0xff] }
 0x352   : > { %v773_v8 = vadd.f32 %v772_v6, %v645_v0  ;;  %v933_v0 = vpop.permute.xlu0 %932  ;;  %v1745_v6 = vld [vmem:[%s2767_s2 + $0xb8] sm:$0xff] }
 0x353   : > { %2143 = vtanh.f32 %v778_v5  ;;  %v1744_v5 = vld [vmem:[%s2767_s2 + $0xb0] sm:$0xff] }
 0x354   : > { %2145 = vtanh.f32 %v773_v8  ;;  %v1923_v10 = vpop.f32.mrb[12].mxu0 }
 0x355   : > { %v788_v11 = vadd.f32 %v1923_v10, %v660_v7  ;;  %v782_v12 = vpop.f32.mrb[13].mxu0  ;;  %v1762_v7 = vld [vmem:[%s2769_s4 + $0x20] sm:$0xff] }
 0x356   : > { %v783_v13 = vadd.f32 %v782_v12, %v655_v9  ;;  %v962_v8 = vpop.permute.xlu0 %961  ;;  %v957_v9 = vpop.permute.xlu1 %956 }
 0x357   : > { %2147 = vtanh.f32 %v788_v11 }
 0x358   : > { %2149 = vtanh.f32 %v783_v13  ;;  %v1926_v15 = vpop.f32.mrb[14].mxu0 }
 0x359   : > { %v2140_v16 = vpop.eup %2139  ;;  %v798_v18 = vadd.f32 %v1926_v15, %v670_v14  ;;  %v792_v19 = vpop.f32.mrb[15].mxu0 }
 0x35a   : > { %v2142_v20 = vpop.eup %2141  ;;  %v793_v21 = vadd.f32 %v792_v19, %v665_v17  ;;  %v972_v10 = vpop.permute.xlu0 %971 }
 0x35b   : > { %2151 = vtanh.f32 %v798_v18  ;;  %v2028_v22 = vpack.c.bf16 %v2140_v16, %v2142_v20  ;;  %v967_v12 = vpop.permute.xlu1 %966 }
 0x35c   : > { %2153 = vtanh.f32 %v793_v21 }
 0x35d   : > { %v2144_v23 = vpop.eup %2143  ;;  %2029 = vmatprep.subr.bf16.mxu1 %v2028_v22 }
 0x35e   : > { %v2146_v24 = vpop.eup %2145  ;;  %2031 = vmatpush3.bf16.msra.mxu1 %v2028_v22  ;;  %v982_v19 = vpop.permute.xlu0 %981 }
 0x35f   : > { %v2032_v25 = vpack.c.bf16 %v2144_v23, %v2146_v24  ;;  %v977_v21 = vpop.permute.xlu1 %976 }
 0x361   : > { %v2148_v26 = vpop.eup %2147  ;;  %2033 = vmatprep.subr.bf16.mxu1 %v2032_v25 }
 0x362   : > { %v2150_v27 = vpop.eup %2149  ;;  %2035 = vmatpush3.bf16.msra.mxu1 %v2032_v25 }
 0x363   : > { %v2036_v28 = vpack.c.bf16 %v2148_v26, %v2150_v27  ;;  %v992_v26 = vpop.permute.xlu0 %991 }
 0x365   : > { %v2152_v29 = vpop.eup %2151  ;;  %2037 = vmatprep.subr.bf16.mxu1 %v2036_v28 }
 0x366   : > { %v2154_v30 = vpop.eup %2153  ;;  %2039 = vmatpush3.bf16.msra.mxu1 %v2036_v28 }
 0x367   : > { %v2040_v31 = vpack.c.bf16 %v2152_v29, %v2154_v30  ;;  %v987_v29 = vpop.permute.xlu1 %986 }
 0x369   : > { %2041 = vmatprep.subr.bf16.mxu1 %v2040_v31 }
 0x36a   : > { %2043 = vmatpush3.bf16.msra.mxu1 %v2040_v31 }
 0x36d   : > { %1944 = vmatmul.mubr.msk.f32.vlgmr.msra.gmra.mrb[2].mxu1 %vm502_vm1, %v1732_v32 }
 0x36e   : > { %1976 = vmatprep.mubr.msk.f32.mxu1 %vm502_vm1, %v1762_v7 }
 0x440   : > { %v1945_v36 = vpop.f32.mrb[2].mxu1 }
 0x441   : > { %v897_v38 = vpop.f32.mrb[3].mxu1  ;;  %v903_v55 = vadd.f32 %v1945_v36, %v823_v52  ;;  %v1231_v52 = vpop.permute.xlu0 %1230 }
 0x442   : > { %v898_v39 = vadd.f32 %v897_v38, %v818_v37 }
 0x443   : > { %v912_v59 = vmul.f32 %v909_v41, %v903_v55 }
 0x444   : > { %v911_v43 = vmul.f32 %v909_v41, %v898_v39 }
 0x445   : > { %v1255_v7 = vpop.permute.xlu0 %1254 }
 0x446   : > { %v913_v44 = vmul.f32 1.442695, %v911_v43  ;;  %v919_v45 = vrot.slane %v911_v43, 4 }
 0x448   : > { %2155 = vpow2.f32 %v913_v44  ;;  %v920_v47 = vadd.f32 %v919_v45, %v911_v43  ;;  %v1763_v45 = vld [vmem:[%s2769_s4 + $0x28] sm:$0xff] }
 0x44a   : > { %v921_v48 = vrot.slane %v920_v47, 2 }
 0x44c   : > { %v922_v50 = vadd.f32 %v921_v48, %v920_v47  ;;  %v1140_v48 = vpop.permute.xlu1 %1139 }
 0x44e   : > { %v923_v54 = vrot.slane %v922_v50, 1 }
 0x450   : > { %v924_v56 = vadd.f32 %v923_v54, %v922_v50 }
 0x452   : > { %v2156_v57 = vpop.eup %2155  ;;  %v2602_v58 = vadd.f32 %v924_v56, %v602_v40 }
 0x453   : > { %v915_v60 = vmul.f32 %v2156_v57, %v2549_v49  ;;  %v1740_v49 = vld [vmem:[%s2767_s2 + $0x90] sm:$0xff] }
 0x455   : > { %v916_v61 = vadd.f32 %v915_v60, %v912_v59  ;;  %v1145_v60 = vpop.permute.xlu1 %1144 }
 0x457   : > { %v917_v62 = vmul.f32 %v916_v61, %v909_v41 }
 0x459   : > { %v2606_v63 = vadd.f32 %v917_v62, %v2556_v53  ;;  %v1741_v53 = vld [vmem:[%s2767_s2 + $0x98] sm:$0xff] }
 0x45b   : > { %926 = vst [vmem:[%s2551_s20 + $0x8] sm:$0xff] %v2606_v63  ;;  %v2611_v1 = vmul.f32 %v933_v0, %v2606_v63 }
 0x45d   : > { %1946 = vmatprep.subr.mxu0 %v2611_v1 }
 0x45e   : > { %1947 = vmatpush3.msra.mxu0 %v2611_v1 }
 0x45f   : > { %1949 = vmatmul.mubr.msk.f32.vlgmr.msra.gmra.mrb[16].mxu0 %vm350_vm0, %v1739_v2 }
 0x460   : > { %1951 = vmatprep.mubr.msk.f32.mxu0 %vm350_vm0, %v1740_v49 }
 0x463   : > { %1952 = vmatmul.mubr.msk.f32.gmra.mrb[18].mxu0 %vm350_vm0, %v1741_v53 }
 0x464   : > { %1954 = vmatprep.mubr.msk.f32.mxu0 %vm350_vm0, %v1742_v3 }
 0x467   : > { %1955 = vmatmul.mubr.msk.f32.gmra.mrb[20].mxu0 %vm350_vm0, %v1743_v4 }
 0x468   : > { %1957 = vmatprep.mubr.msk.f32.mxu0 %vm350_vm0, %v1744_v5 }
 0x46b   : > { %1958 = vmatmul.mubr.msk.f32.gmra.mrb[22].mxu0 %vm350_vm0, %v1745_v6 }
 0x46c   : > { %1981 = vmatprep.mubr.msk.f32.mxu0 %vm350_vm0, %v1769_v46 }
 0x532   : > { %v1950_v11 = vpop.f32.mrb[16].mxu0 }
 0x533   : > { %v1090_v13 = vadd.f32 %v1950_v11, %v962_v8  ;;  %v1084_v14 = vpop.f32.mrb[17].mxu0  ;;  %v1775_v11 = vld [vmem:[%s2767_s2 + $0xf0] sm:$0xff] }
 0x534   : > { %v1085_v15 = vadd.f32 %v1084_v14, %v957_v9  ;;  %v1770_v9 = vld [vmem:[%s2767_s2 + $0xc8] sm:$0xff]  ;;  %v1284_v14 = vpop.permute.xlu0 %1283 }
 0x535   : > { %2157 = vtanh.f32 %v1090_v13  ;;  %v1793_v13 = vld [vmem:[%s2769_s4 + $0x30] sm:$0xff] }
 0x536   : > { %2159 = vtanh.f32 %v1085_v15  ;;  %v1953_v16 = vpop.f32.mrb[18].mxu0  ;;  %v1279_v15 = vpop.permute.xlu1 %1278 }
 0x537   : > { %v1100_v17 = vadd.f32 %v1953_v16, %v972_v10  ;;  %v1094_v18 = vpop.f32.mrb[19].mxu0  ;;  %v1774_v10 = vld [vmem:[%s2767_s2 + $0xe8] sm:$0xff] }
 0x538   : > { %v1095_v20 = vadd.f32 %v1094_v18, %v967_v12  ;;  %v1776_v12 = vld [vmem:[%s2767_s2 + $0xf8] sm:$0xff]  ;;  %v1294_v16 = vpop.permute.xlu0 %1293 }
 0x539   : > { %2161 = vtanh.f32 %v1100_v17 }
 0x53a   : > { %2163 = vtanh.f32 %v1095_v20  ;;  %v1956_v22 = vpop.f32.mrb[20].mxu0  ;;  %v1289_v18 = vpop.permute.xlu1 %1288 }
 0x53b   : > { %v1110_v23 = vadd.f32 %v1956_v22, %v982_v19  ;;  %v1104_v24 = vpop.f32.mrb[21].mxu0 }
 0x53c   : > { %v1105_v25 = vadd.f32 %v1104_v24, %v977_v21 }
 0x53d   : > { %2165 = vtanh.f32 %v1110_v23 }
 0x53e   : > { %2167 = vtanh.f32 %v1105_v25  ;;  %v1959_v27 = vpop.f32.mrb[22].mxu0  ;;  %v1304_v25 = vpop.permute.xlu0 %1303 }
 0x53f   : > { %v2158_v28 = vpop.eup %2157  ;;  %v1120_v30 = vadd.f32 %v1959_v27, %v992_v26  ;;  %v1114_v31 = vpop.f32.mrb[23].mxu0 }
 0x540   : > { %v2160_v32 = vpop.eup %2159  ;;  %v1115_v33 = vadd.f32 %v1114_v31, %v987_v29  ;;  %v1299_v27 = vpop.permute.xlu1 %1298 }
 0x541   : > { %2169 = vtanh.f32 %v1120_v30  ;;  %v2044_v34 = vpack.c.bf16 %v2158_v28, %v2160_v32 }
 0x542   : > { %2171 = vtanh.f32 %v1115_v33  ;;  %v1314_v32 = vpop.permute.xlu0 %1313 }
 0x543   : > { %v2162_v35 = vpop.eup %2161  ;;  %2045 = vmatprep.subr.bf16.mxu1 %v2044_v34 }
 0x544   : > { %v2164_v36 = vpop.eup %2163  ;;  %2047 = vmatpush3.bf16.msra.mxu1 %v2044_v34 }
 0x545   : > { %v2048_v37 = vpack.c.bf16 %v2162_v35, %v2164_v36  ;;  %v1309_v35 = vpop.permute.xlu1 %1308 }
 0x547   : > { %v2166_v38 = vpop.eup %2165  ;;  %2049 = vmatprep.subr.bf16.mxu1 %v2048_v37 }
 0x548   : > { %v2168_v39 = vpop.eup %2167  ;;  %2051 = vmatpush3.bf16.msra.mxu1 %v2048_v37 }
 0x549   : > { %v2052_v41 = vpack.c.bf16 %v2166_v38, %v2168_v39 }
 0x54b   : > { %v2170_v42 = vpop.eup %2169  ;;  %2053 = vmatprep.subr.bf16.mxu1 %v2052_v41 }
 0x54c   : > { %v2172_v43 = vpop.eup %2171  ;;  %2055 = vmatpush3.bf16.msra.mxu1 %v2052_v41 }
 0x54d   : > { %v2056_v44 = vpack.c.bf16 %v2170_v42, %v2172_v43 }
 0x54f   : > { %2057 = vmatprep.subr.bf16.mxu1 %v2056_v44 }
 0x550   : > { %2059 = vmatpush3.bf16.msra.mxu1 %v2056_v44 }
 0x553   : > { %1977 = vmatmul.mubr.msk.f32.vlgmr.msra.gmra.mrb[4].mxu1 %vm502_vm1, %v1763_v45 }
 0x554   : > { %2009 = vmatprep.mubr.msk.f32.mxu1 %vm502_vm1, %v1793_v13 }
 0x626   : > { %v1978_v47 = vpop.f32.mrb[4].mxu1 }
 0x627   : > { %v1219_v51 = vpop.f32.mrb[5].mxu1  ;;  %v1225_v62 = vadd.f32 %v1978_v47, %v1145_v60 }
 0x628   : > { %v1220_v50 = vadd.f32 %v1219_v51, %v1140_v48 }
 0x629   : > { %v1234_v53 = vmul.f32 %v1231_v52, %v1225_v62 }
 0x62a   : > { %v1233_v54 = vmul.f32 %v1231_v52, %v1220_v50 }
 0x62c   : > { %v1235_v55 = vmul.f32 1.442695, %v1233_v54  ;;  %v1241_v40 = vrot.slane %v1233_v54, 4 }
 0x62e   : > { %2173 = vpow2.f32 %v1235_v55  ;;  %v1242_v56 = vadd.f32 %v1241_v40, %v1233_v54  ;;  %v1462_v55 = vpop.permute.xlu1 %1461 }
 0x630   : > { %v1243_v57 = vrot.slane %v1242_v56, 2 }
 0x632   : > { %v1244_v59 = vadd.f32 %v1243_v57, %v1242_v56  ;;  %v1553_v57 = vpop.permute.xlu0 %1552 }
 0x634   : > { %v1245_v61 = vrot.slane %v1244_v59, 1 }
 0x636   : > { %v1246_v0 = vadd.f32 %v1245_v61, %v1244_v59 }
 0x638   : > { %v2174_v2 = vpop.eup %2173  ;;  %v2656_v49 = vadd.f32 %v1246_v0, %v2602_v58  ;;  %v1771_v58 = vld [vmem:[%s2767_s2 + $0xd0] sm:$0xff] }
 0x639   : > { %v1237_v3 = vmul.f32 %v2174_v2, %v2606_v63  ;;  %v1772_v63 = vld [vmem:[%s2767_s2 + $0xd8] sm:$0xff] }
 0x63b   : > { %v1238_v4 = vadd.f32 %v1237_v3, %v1234_v53  ;;  %v1467_v53 = vpop.permute.xlu1 %1466 }
 0x63d   : > { %v1239_v5 = vmul.f32 %v1238_v4, %v1231_v52  ;;  %v1794_v52 = vld [vmem:[%s2769_s4 + $0x38] sm:$0xff] }
 0x63f   : > { %v2660_v6 = vadd.f32 %v1239_v5, %v2611_v1  ;;  %v1773_v1 = vld [vmem:[%s2767_s2 + $0xe0] sm:$0xff] }
 0x641   : > { %1248 = vst [vmem:[%s2551_s20 + $0x10] sm:$0xff] %v2660_v6  ;;  %v2665_v8 = vmul.f32 %v1255_v7, %v2660_v6 }
 0x643   : > { %1979 = vmatprep.subr.mxu0 %v2665_v8 }
 0x644   : > { %1980 = vmatpush3.msra.mxu0 %v2665_v8 }
 0x645   : > { %1982 = vmatmul.mubr.msk.f32.vlgmr.msra.gmra.mrb[24].mxu0 %vm350_vm0, %v1770_v9 }
 0x646   : > { %1984 = vmatprep.mubr.msk.f32.mxu0 %vm350_vm0, %v1771_v58 }
 0x649   : > { %1985 = vmatmul.mubr.msk.f32.gmra.mrb[26].mxu0 %vm350_vm0, %v1772_v63 }
 0x64a   : > { %1987 = vmatprep.mubr.msk.f32.mxu0 %vm350_vm0, %v1773_v1 }
 0x64d   : > { %1988 = vmatmul.mubr.msk.f32.gmra.mrb[28].mxu0 %vm350_vm0, %v1774_v10 }
 0x64e   : > { %1990 = vmatprep.mubr.msk.f32.mxu0 %vm350_vm0, %v1775_v11 }
 0x651   : > { %1991 = vmatmul.mubr.msk.f32.gmra.mrb[30].mxu0 %vm350_vm0, %v1776_v12 }
 0x718   : > { %v1983_v17 = vpop.f32.mrb[24].mxu0 }
 0x719   : > { %v1412_v19 = vadd.f32 %v1983_v17, %v1284_v14  ;;  %v1406_v20 = vpop.f32.mrb[25].mxu0 }
 0x71a   : > { %v1407_v21 = vadd.f32 %v1406_v20, %v1279_v15 }
 0x71b   : > { %2175 = vtanh.f32 %v1412_v19 }
 0x71c   : > { %2177 = vtanh.f32 %v1407_v21  ;;  %v1986_v22 = vpop.f32.mrb[26].mxu0 }
 0x71d   : > { %v1422_v23 = vadd.f32 %v1986_v22, %v1294_v16  ;;  %v1416_v24 = vpop.f32.mrb[27].mxu0 }
 0x71e   : > { %v1417_v26 = vadd.f32 %v1416_v24, %v1289_v18 }
 0x71f   : > { %2179 = vtanh.f32 %v1422_v23 }
 0x720   : > { %2181 = vtanh.f32 %v1417_v26  ;;  %v1989_v28 = vpop.f32.mrb[28].mxu0 }
 0x721   : > { %v1432_v29 = vadd.f32 %v1989_v28, %v1304_v25  ;;  %v1426_v30 = vpop.f32.mrb[29].mxu0 }
 0x722   : > { %v1427_v31 = vadd.f32 %v1426_v30, %v1299_v27 }
 0x723   : > { %2183 = vtanh.f32 %v1432_v29 }
 0x724   : > { %2185 = vtanh.f32 %v1427_v31  ;;  %v1992_v33 = vpop.f32.mrb[30].mxu0 }
 0x725   : > { %v2176_v34 = vpop.eup %2175  ;;  %v1442_v36 = vadd.f32 %v1992_v33, %v1314_v32  ;;  %v1436_v37 = vpop.f32.mrb[31].mxu0 }
 0x726   : > { %v2178_v38 = vpop.eup %2177  ;;  %v1437_v39 = vadd.f32 %v1436_v37, %v1309_v35 }
 0x727   : > { %2187 = vtanh.f32 %v1442_v36  ;;  %v2060_v41 = vpack.c.bf16 %v2176_v34, %v2178_v38 }
 0x728   : > { %2189 = vtanh.f32 %v1437_v39 }
 0x729   : > { %v2180_v42 = vpop.eup %2179  ;;  %2061 = vmatprep.subr.bf16.mxu1 %v2060_v41 }
 0x72a   : > { %v2182_v43 = vpop.eup %2181  ;;  %2063 = vmatpush3.bf16.msra.mxu1 %v2060_v41 }
 0x72b   : > { %v2064_v44 = vpack.c.bf16 %v2180_v42, %v2182_v43 }
 0x72d   : > { %v2184_v45 = vpop.eup %2183  ;;  %2065 = vmatprep.subr.bf16.mxu1 %v2064_v44 }
 0x72e   : > { %v2186_v46 = vpop.eup %2185  ;;  %2067 = vmatpush3.bf16.msra.mxu1 %v2064_v44 }
 0x72f   : > { %v2068_v47 = vpack.c.bf16 %v2184_v45, %v2186_v46 }
 0x731   : > { %v2188_v48 = vpop.eup %2187  ;;  %2069 = vmatprep.subr.bf16.mxu1 %v2068_v47 }
 0x732   : > { %v2190_v51 = vpop.eup %2189  ;;  %2071 = vmatpush3.bf16.msra.mxu1 %v2068_v47 }
 0x733   : > { %v2072_v50 = vpack.c.bf16 %v2188_v48, %v2190_v51 }
 0x735   : > { %2073 = vmatprep.subr.bf16.mxu1 %v2072_v50 }
 0x736   : > { %2075 = vmatpush3.bf16.msra.mxu1 %v2072_v50 }
 0x739   : > { %2010 = vmatmul.mubr.msk.f32.vlgmr.msra.gmra.mrb[6].mxu1 %vm502_vm1, %v1794_v52 }
 0x80c   : > { %v2011_v54 = vpop.f32.mrb[6].mxu1 }
 0x80d   : > { %v1541_v40 = vpop.f32.mrb[7].mxu1  ;;  %v1547_v4 = vadd.f32 %v2011_v54, %v1467_v53 }
 0x80e   : > { %v1542_v56 = vadd.f32 %v1541_v40, %v1462_v55 }
 0x80f   : > { %v1556_v58 = vmul.f32 %v1553_v57, %v1547_v4 }
 0x810   : > { %v1555_v59 = vmul.f32 %v1553_v57, %v1542_v56 }
 0x812   : > { %v1557_v60 = vmul.f32 1.442695, %v1555_v59  ;;  %v1563_v61 = vrot.slane %v1555_v59, 4 }
 0x814   : > { %2191 = vpow2.f32 %v1557_v60  ;;  %v1564_v62 = vadd.f32 %v1563_v61, %v1555_v59 }
 0x816   : > { %v1565_v0 = vrot.slane %v1564_v62, 2 }
 0x818   : > { %v1566_v2 = vadd.f32 %v1565_v0, %v1564_v62 }
 0x81a   : > { %v1567_v3 = vrot.slane %v1566_v2, 1 }
 0x81c   : > { %v1568_v5 = vadd.f32 %v1567_v3, %v1566_v2 }
 0x81e   : > { %v2192_v7 = vpop.eup %2191  ;;  %v1569_v9 = vadd.f32 %v1568_v5, %v2656_v49 }
 0x81f   : > { %v1559_v63 = vmul.f32 %v2192_v7, %v2660_v6 }
 0x821   : > { %v1560_v1 = vadd.f32 %v1559_v63, %v1556_v58 }
 0x823   : > { %v1561_v10 = vmul.f32 %v1560_v1, %v1553_v57 }
 0x825   : > { %v1562_v11 = vadd.f32 %v1561_v10, %v2665_v8 }
 0x827   : > { %v1571_v49 = vmul.f32 %v1562_v11, %v1562_v11  ;;  %1570 = vst [vmem:[%s2551_s20 + $0x18] sm:$0xff] %v1562_v11 }
 0x828   : > { %2206 = shalt.err (!%p2203_p3)
}
 0x829   : > { %s2207_s17 = scalar_lea.hbm %s2712_s14, 512  ;;  %s2211_s23 = scalar_lea.hbm %s2771_s6, 1024 }
 0x82a   : > { %p2208_p4 = scmp.ne.s32.totalorder %s2712_s14, %s2207_s17  ;;  %p2212_p9 = scmp.lt.u32.totalorder %s2712_s14, %s2771_s6 }
 0x82b   : > { %p2213_p10 = scmp.lt.u32.totalorder %s2211_s23, %s2207_s17  ;;  %p2215_p12 = scmp.lt.u32.totalorder %s2207_s17, %s2712_s14 }
 0x82c   : > { %p2209_p7 = pnand %p2208_p4, %p2340_p5 }
 0x82d   : > { %p2214_p11 = por %p2213_p10, %p2212_p9 }
 0x82e   : > { %p2210_p8 = pneg %p2209_p7 }
 0x82f   : > { %p2216_p13 = por %p2215_p12, %p2214_p11 }
 0x831   : > { %p2217_p0 = pnand %p2216_p13, %p2210_p8 }
 0x833   : > { %2220 = shalt.err (!%p2217_p0)
}
 0x834   : > { %s2259_s13 = smov 128   ;;  %s2260_s28 = smov 256   ;;  %v1572_v6 = vrot.slane %v1571_v49, 4  ;;  %vm1580_vm2 = vcmask 1040384  }
 0x835   : > { %s2261_s16 = smov 8   ;;  %s1695_s18 = sshll.u32 %s2488_s19, 1 }
 0x836   : > { %2076 = dma.vmem_to_hbm [thread:$0]  (%p2340_p5), %s2714_s8, 512, %s2712_s14, %s2720_s15, %s2259_s13, %s2260_s28, %s2261_s16   ;;  %v1573_v8 = vadd.f32 %v1572_v6, %v1571_v49 }
 0x837   : > { %s284_s20 = scalar_lea.vmem %s2772_s7, %s1695_s18 }
 0x838   : > { %v1574_v12 = vrot.slane %v1573_v8, 2 }
 0x83a   : > { %v1575_v13 = vadd.f32 %v1574_v12, %v1573_v8 }
 0x83c   : > { %v1576_v14 = vrot.slane %v1575_v13, 1 }
 0x83e   : > { %v1577_v15 = vadd.f32 %v1576_v14, %v1575_v13 }
 0x840   : > { %v1578_v16 = vmul.f32 -0.5, %v1577_v15 }
 0x842   : > { %v1799_v17 = vadd.f32 -7.351508, %v1578_v16 }
 0x844   : > { %v1581_v18 = vsel %vm1580_vm2, %v1799_v17, %v1569_v9 }
 0x845   : > { %1582 = vst [vmem:[%s284_s20] sm:$0x3] %v1581_v18 }
 0x846 PF: > { %p2082_p5 = scmp.ge.s32.totalorder %s2255_s27, 2  ;;  %s1618_s11 = sand.u32 1, %s2243_s24  }
 0x847   : > { %s1619_s8 = scalar_lea.sflag [#allocation3], %s1618_s11 }
 0x848   : > { %p2079_p1 = pnand %p2082_p5, %p2344_p6 }
 0x84a   : > { %2238 = dma.done.wait (!%p2079_p1), %s1619_s8, 512  }
 0x84b   : > { %2240 = vsyncadd (!%p2079_p1), %s1619_s8, 4294966784  ;;  %p18_p2 = scmp.ge.s32.totalorder %s2327_s30, 4   ;;  %s2775_s24 = smov %s2247_s25 }
 0x84c   : > { %s2776_s25 = smov %s2251_s26  ;;  %s2777_s26 = smov %s2338_s10 }
 0x84d   : > { %s2778_s27 = smov %s2327_s30  ;;  %20 = sbr.rel (!%p18_p2) target bundleno = 3 (0x3), region = 106 }
 0x854   :  { %1631 = vsyncpa [#allocation3], 1 }
 0x855   :  { %1633 = vsyncpa [#allocation3 + $0x1], 1 }

</bundles_post_ra>
